<compile_context>
chip_gen: v7x
topology: tpu7x:2x2x1
jax: 0.10.0
libtpu: 0.0.40
codegen_flags: <defaults>
</compile_context>

<pallas_src>
import jax
import jax.numpy as jnp
from jax.experimental import pallas as pl
from jax.experimental.pallas import tpu as pltpu


# ----------------------------------------------------------------------------
# Kernels
# ----------------------------------------------------------------------------
def _ffn_kernel_resident(x_ref, w1_ref, b1_ref, w2_ref, b2_ref, o_ref):
    # x_ref: (TM, H) f32   w1_ref: (H, F) bf16   b1_ref: (1, F) f32
    # w2_ref: (F, H) bf16  b2_ref: (1, H) f32    o_ref: (TM, H) out_dtype
    x = x_ref[...].astype(jnp.bfloat16)                    # on-chip cast (VPU)
    h = jnp.dot(x, w1_ref[...], preferred_element_type=jnp.float32)
    h = jnp.maximum(h + b1_ref[...], 0.0)                  # bias + ReLU in f32
    # TODO(synk): training-mode dropout mask would be applied to `h` here.
    out = jnp.dot(h.astype(jnp.bfloat16), w2_ref[...],
                  preferred_element_type=jnp.float32)
    o_ref[...] = (out + b2_ref[...]).astype(o_ref.dtype)


def _ffn_kernel_fblocked(x_ref, w1_ref, b1_ref, w2_ref, b2_ref, o_ref, acc_ref):
    # Grid = (M tiles, F tiles); F axis is the reduction ("arbitrary", last).
    # x_ref: (TM, H) f32   w1_ref: (H, TF) bf16   b1_ref: (1, TF) f32
    # w2_ref: (TF, H) bf16 b2_ref: (1, H) f32     o_ref: (TM, H)
    # acc_ref: (TM, H) f32 VMEM accumulator.
    f = pl.program_id(1)

    @pl.when(f == 0)
    def _init():
        acc_ref[...] = jnp.zeros_like(acc_ref)

    x = x_ref[...].astype(jnp.bfloat16)
    h = jnp.dot(x, w1_ref[...], preferred_element_type=jnp.float32)
    h = jnp.maximum(h + b1_ref[...], 0.0)                  # per-F-chunk bias+ReLU
    acc_ref[...] += jnp.dot(h.astype(jnp.bfloat16), w2_ref[...],
                            preferred_element_type=jnp.float32)

    @pl.when(f == pl.num_programs(1) - 1)
    def _finalize():
        o_ref[...] = (acc_ref[...] + b2_ref[...]).astype(o_ref.dtype)


# ----------------------------------------------------------------------------
# Helpers
# ----------------------------------------------------------------------------
def _round_up(v, m):
    return (v + m - 1) // m * m


def _tpu_vmem_bytes():
    try:
        return int(pltpu.get_tpu_info().vmem_capacity_bytes)
    except Exception:
        return 128 * 1024 * 1024  # v5e/v6e default if query unavailable


def _vmem_limit_bytes(request):
    phys = _tpu_vmem_bytes()
    cap = int(phys * 0.8)  # leave headroom for Mosaic internal scratch/semaphores
    return int(max(min(request, cap), min(32 * 1024 * 1024, cap)))


def _choose_tm(M, tm_max):
    if M <= 8:
        return 8
    # >= 2 grid steps so the "parallel" M axis shards across both v7x TCs;
    # multiple of 8 (sublane); MXU-tile aligned (256 v6e/v7x, 128 v5e) when big.
    tm = min(tm_max, _round_up(pl.cdiv(M, 2), 8))
    if tm >= 256:
        tm -= tm % 256
    elif tm >= 128:
        tm -= tm % 128
    return max(tm, 8)


def _choose_ff_block(H, F):
    # Block the F axis only when resident bf16 W1+W2 would exceed ~24 MiB
    # (they no longer fit comfortably in v7x's 64 MiB VMEM alongside tiles).
    resident_bytes = 2 * 2 * H * F
    if resident_bytes <= 24 * 1024 * 1024:
        return None
    return 512


# ----------------------------------------------------------------------------
# One-time weight pre-formatting (hoisted out of the per-call path)
# ----------------------------------------------------------------------------
def prepare_ffn_params(w1, b1, w2, b2, ff_block="auto"):
    """Pre-format FFN parameters once: bf16 MXU operands, (1, F)/(1, H) bias
    rows, and (only when the F axis will be grid-blocked) zero-pad F to a
    multiple of the F block so padded columns contribute exactly zero."""
    H, F = w1.shape
    if ff_block == "auto":
        ff_block = _choose_ff_block(H, F)
    if ff_block is not None and ff_block >= F:
        ff_block = None  # a single F step == resident path

    if ff_block is not None and F % ff_block != 0:
        Fp = _round_up(F, ff_block)
        w1 = jnp.zeros((H, Fp), w1.dtype).at[:, :F].set(w1)
        b1 = jnp.zeros((Fp,), b1.dtype).at[:F].set(b1)
        w2 = jnp.zeros((Fp, H), w2.dtype).at[:F, :].set(w2)

    return {
        "w1": w1.astype(jnp.bfloat16),
        "b1": b1.astype(jnp.float32).reshape(1, -1),
        "w2": w2.astype(jnp.bfloat16),
        "b2": b2.astype(jnp.float32).reshape(1, -1),
        "ff_block": ff_block,
        "hidden": H,
    }


# ----------------------------------------------------------------------------
# Forward
# ----------------------------------------------------------------------------
def ffn_forward(x, params, *, tm_max=None, out_dtype=None):
    """x: (B, S, H). Returns (B, S, H) in out_dtype (default: x.dtype)."""
    B, S, H = x.shape
    w1, b1, w2, b2 = params["w1"], params["b1"], params["w2"], params["b2"]
    ff_block = params["ff_block"]
    Fp = w1.shape[1]
    M = B * S
    out_dtype = jnp.dtype(out_dtype or x.dtype)

    if tm_max is None:
        # Bigger M tiles on 128 MiB VMEM parts (v5e/v6e); keep 512 on v7x.
        tm_max = 1024 if _tpu_vmem_bytes() >= 96 * 1024 * 1024 else 512

    TM = _choose_tm(M, tm_max)
    nm = pl.cdiv(M, TM)
    x2d = x.reshape(M, H)  # metadata-only reshape; no extra HBM pass

    osz = out_dtype.itemsize
    flops = 4 * M * H * Fp  # two matmuls
    bytes_accessed = (x2d.size * 4 + w1.size * 2 + w2.size * 2
                      + (Fp + H) * 4 + M * H * osz)
    cost = pl.CostEstimate(flops=flops, transcendentals=0,
                           bytes_accessed=bytes_accessed)

    if ff_block is None:
        # ------------------ resident-weight path (grid over M only) ----------
        vmem_req = (2 * TM * H * 4            # x tile (f32), double-buffered
                    + 2 * TM * H * osz        # out tile, double-buffered
                    + H * Fp * 2 + Fp * H * 2 # W1/W2 (bf16), single-buffered
                    + (Fp + H) * 4            # biases
                    + TM * Fp * (4 + 2))      # f32 hidden + bf16 copy
        vmem_limit = _vmem_limit_bytes(2 * vmem_req)

        def _call(single_buffer_weights):
            if single_buffer_weights:
                # Weights/biases have constant block index -> single buffer
                # (default double-buffering would just duplicate them in VMEM).
                def wspec(shape, imap):
                    return pl.BlockSpec(shape, imap, pipeline_mode=pl.Buffered(1))
            else:
                def wspec(shape, imap):
                    return pl.BlockSpec(shape, imap)
            return pl.pallas_call(
                _ffn_kernel_resident,
                out_shape=jax.ShapeDtypeStruct((M, H), out_dtype),
                grid=(nm,),
                in_specs=[
                    pl.BlockSpec((TM, H), lambda i: (i, 0)),  # activation stream
                    wspec((H, Fp), lambda i: (0, 0)),         # W1 resident
                    wspec((1, Fp), lambda i: (0, 0)),         # b1 resident
                    wspec((Fp, H), lambda i: (0, 0)),         # W2 resident
                    wspec((1, H), lambda i: (0, 0)),          # b2 resident
                ],
                out_specs=pl.BlockSpec((TM, H), lambda i: (i, 0)),
                compiler_params=pltpu.CompilerParams(
                    dimension_semantics=("parallel",),
                    vmem_limit_bytes=vmem_limit),
                cost_estimate=cost,
            )(x2d, w1, b1, w2, b2)

        try:
            out2d = _call(True)
        except Exception:
            # Fallback if this Mosaic build rejects pl.Buffered(1).
            out2d = _call(False)

    else:
        # ------------------ F-blocked path (grid over M and F) ---------------
        TF = ff_block
        nf = Fp // TF
        vmem_req = (2 * TM * H * 4
                    + 2 * TM * H * osz
                    + 2 * (H * TF * 2 + TF * H * 2)  # streamed W1/W2 chunks
                    + 2 * TF * 4 + H * 4
                    + TM * H * 4                     # f32 accumulator scratch
                    + TM * TF * (4 + 2))
        vmem_limit = _vmem_limit_bytes(2 * vmem_req)

        out2d = pl.pallas_call(
            _ffn_kernel_fblocked,
            out_shape=jax.ShapeDtypeStruct((M, H), out_dtype),
            grid=(nm, nf),
            in_specs=[
                pl.BlockSpec((TM, H), lambda i, f: (i, 0)),   # x resident over F
                pl.BlockSpec((H, TF), lambda i, f: (0, f)),   # W1 chunk streams
                pl.BlockSpec((1, TF), lambda i, f: (0, f)),   # b1 chunk streams
                pl.BlockSpec((TF, H), lambda i, f: (f, 0)),   # W2 chunk streams
                pl.BlockSpec((1, H), lambda i, f: (0, 0)),    # b2 resident
            ],
            out_specs=pl.BlockSpec((TM, H), lambda i, f: (i, 0)),
            scratch_shapes=[pltpu.VMEM((TM, H), jnp.float32)],
            compiler_params=pltpu.CompilerParams(
                dimension_semantics=("parallel", "arbitrary"),
                vmem_limit_bytes=vmem_limit),
            cost_estimate=cost,
        )(x2d, w1, b1, w2, b2)

    return out2d.reshape(B, S, H)


# ----------------------------------------------------------------------------
# Reference (mirrors the kernel's bf16-operand / f32-accumulate math)
# ----------------------------------------------------------------------------
def _ffn_reference(x, w1, b1, w2, b2):
    f32 = jnp.float32
    xq = x.astype(jnp.bfloat16).astype(f32)
    w1q = w1.astype(jnp.bfloat16).astype(f32)
    w2q = w2.astype(jnp.bfloat16).astype(f32)
    h = jnp.maximum(xq @ w1q + b1.astype(f32), 0.0)
    hq = h.astype(jnp.bfloat16).astype(f32)
    return hq @ w2q + b2.astype(f32)


# ----------------------------------------------------------------------------
# Self-test
# ----------------------------------------------------------------------------
if __name__ == "__main__":
    # Config analogue: HIDDEN_SIZE=32, FF_SIZE=64, DROPOUT_R=0.0 (identity).
    HIDDEN, FF = 32, 64
    B, S = 2, 8

    key = jax.random.PRNGKey(0)
    kx, k1, k2, k3, k4 = jax.random.split(key, 5)
    x = jax.random.normal(kx, (B, S, HIDDEN), dtype=jnp.float32)

    bound1 = 1.0 / (HIDDEN ** 0.5)
    bound2 = 1.0 / (FF ** 0.5)
    w1 = jax.random.uniform(k1, (HIDDEN, FF), jnp.float32, -bound1, bound1)
    b1 = jax.random.uniform(k2, (FF,), jnp.float32, -bound1, bound1)
    w2 = jax.random.uniform(k3, (FF, HIDDEN), jnp.float32, -bound2, bound2)
    b2 = jax.random.uniform(k4, (HIDDEN,), jnp.float32, -bound2, bound2)

    params = prepare_ffn_params(w1, b1, w2, b2)        # resident-weight path
    out = ffn_forward(x, params)
    jax.block_until_ready(out)
    assert out.shape == (B, S, HIDDEN) and out.dtype == x.dtype

    ref = _ffn_reference(x, w1, b1, w2, b2)
    err = float(jnp.max(jnp.abs(out - ref)))
    assert err < 2e-3, err

    # Second small config exercising the F-blocked path (forced) + bf16 output.
    H2, F2, B2, S2 = 128, 512, 2, 64
    kx, k1, k2, k3, k4 = jax.random.split(jax.random.PRNGKey(1), 5)
    x2 = jax.random.normal(kx, (B2, S2, H2), dtype=jnp.float32)
    b1h, b2h = 1.0 / (H2 ** 0.5), 1.0 / (F2 ** 0.5)
    w1b = jax.random.uniform(k1, (H2, F2), jnp.float32, -b1h, b1h)
    b1b = jax.random.uniform(k2, (F2,), jnp.float32, -b1h, b1h)
    w2b = jax.random.uniform(k3, (F2, H2), jnp.float32, -b2h, b2h)
    b2b = jax.random.uniform(k4, (H2,), jnp.float32, -b2h, b2h)

    params2 = prepare_ffn_params(w1b, b1b, w2b, b2b, ff_block=256)
    out2 = ffn_forward(x2, params2, out_dtype=jnp.bfloat16)
    jax.block_until_ready(out2)
    assert out2.shape == (B2, S2, H2) and out2.dtype == jnp.bfloat16

    ref2 = _ffn_reference(x2, w1b, b1b, w2b, b2b)
    err2 = float(jnp.max(jnp.abs(out2.astype(jnp.float32) - ref2)))
    assert err2 < 5e-2, err2

    print("KERNEL_OK")
</pallas_src>

<mosaic_0001>
module attributes {stable_mosaic.version = 11 : i64} {
  func.func @_ffn_kernel_resident(%arg0: i32, %arg1: memref<8x32xf32, #tpu.memory_space<vmem>>, %arg2: memref<32x64xbf16, #tpu.memory_space<vmem>>, %arg3: memref<1x64xf32, #tpu.memory_space<vmem>>, %arg4: memref<64x32xbf16, #tpu.memory_space<vmem>>, %arg5: memref<1x32xf32, #tpu.memory_space<vmem>>, %arg6: memref<8x32xf32, #tpu.memory_space<vmem>>) attributes {dimension_semantics = [#tpu.dimension_semantics<parallel>], iteration_bounds = array<i64: 2>, scalar_prefetch = 0 : i64, scratch_operands = 0 : i64, tpu.core_type = #tpu.core_type<tc>, window_params = [{transform_indices = @transform_0, window_bounds = array<i64: 8, 32>}, {pipeline_mode = #tpu.pipeline_mode<synchronous>, transform_indices = @transform_1, window_bounds = array<i64: 32, 64>}, {pipeline_mode = #tpu.pipeline_mode<synchronous>, transform_indices = @transform_2, window_bounds = array<i64: 1, 64>}, {pipeline_mode = #tpu.pipeline_mode<synchronous>, transform_indices = @transform_3, window_bounds = array<i64: 64, 32>}, {pipeline_mode = #tpu.pipeline_mode<synchronous>, transform_indices = @transform_4, window_bounds = array<i64: 1, 32>}, {transform_indices = @transform_5, window_bounds = array<i64: 8, 32>}]} {
    %c0 = arith.constant 0 : index
    %c0_0 = arith.constant 0 : index
    %0 = vector.load %arg1[%c0, %c0_0] : memref<8x32xf32, #tpu.memory_space<vmem>>, vector<8x32xf32>
    %1 = arith.truncf %0 : vector<8x32xf32> to vector<8x32xbf16>
    %c0_1 = arith.constant 0 : index
    %c0_2 = arith.constant 0 : index
    %2 = vector.load %arg2[%c0_1, %c0_2] : memref<32x64xbf16, #tpu.memory_space<vmem>>, vector<32x64xbf16>
    %cst = arith.constant dense<0.000000e+00> : vector<8x64xf32>
    %3 = tpu.matmul %1, %2, %cst {dimension_numbers = #tpu.dot_dimension_numbers<[1], [0], [0], [1], [0, 0, 1, 1], [], []>} : vector<8x32xbf16>, vector<32x64xbf16>, vector<8x64xf32> -> vector<8x64xf32>
    %c0_3 = arith.constant 0 : index
    %c0_4 = arith.constant 0 : index
    %4 = vector.load %arg3[%c0_3, %c0_4] : memref<1x64xf32, #tpu.memory_space<vmem>>, vector<1x64xf32>
    %5 = vector.broadcast %4 : vector<1x64xf32> to vector<8x64xf32>
    %6 = arith.addf %3, %5 : vector<8x64xf32>
    %cst_5 = arith.constant 0.000000e+00 : f32
    %7 = vector.broadcast %cst_5 : f32 to vector<8x64xf32>
    %8 = arith.maximumf %6, %7 : vector<8x64xf32>
    %9 = arith.truncf %8 : vector<8x64xf32> to vector<8x64xbf16>
    %c0_6 = arith.constant 0 : index
    %c0_7 = arith.constant 0 : index
    %10 = vector.load %arg4[%c0_6, %c0_7] : memref<64x32xbf16, #tpu.memory_space<vmem>>, vector<64x32xbf16>
    %cst_8 = arith.constant dense<0.000000e+00> : vector<8x32xf32>
    %11 = tpu.matmul %9, %10, %cst_8 {dimension_numbers = #tpu.dot_dimension_numbers<[1], [0], [0], [1], [0, 0, 1, 1], [], []>} : vector<8x64xbf16>, vector<64x32xbf16>, vector<8x32xf32> -> vector<8x32xf32>
    %c0_9 = arith.constant 0 : index
    %c0_10 = arith.constant 0 : index
    %12 = vector.load %arg5[%c0_9, %c0_10] : memref<1x32xf32, #tpu.memory_space<vmem>>, vector<1x32xf32>
    %13 = vector.broadcast %12 : vector<1x32xf32> to vector<8x32xf32>
    %14 = arith.addf %11, %13 : vector<8x32xf32>
    %c0_11 = arith.constant 0 : index
    %c0_12 = arith.constant 0 : index
    %15 = vector.load %arg6[%c0_11, %c0_12] : memref<8x32xf32, #tpu.memory_space<vmem>>, vector<8x32xf32>
    tpu.vector_store %arg6[%c0_11, %c0_12], %14 {strides = array<i32>} : memref<8x32xf32, #tpu.memory_space<vmem>>, vector<8x32xf32>,
    return
  }
  func.func @transform_0(%arg0: i32) -> (i32, i32) {
    %c0_i32 = arith.constant 0 : i32
    %c0_i32_0 = arith.constant 0 : i32
    return %arg0, %c0_i32 : i32, i32
  }
  func.func @transform_1(%arg0: i32) -> (i32, i32) {
    %c0_i32 = arith.constant 0 : i32
    %c0_i32_0 = arith.constant 0 : i32
    %c0_i32_1 = arith.constant 0 : i32
    return %c0_i32, %c0_i32_0 : i32, i32
  }
  func.func @transform_2(%arg0: i32) -> (i32, i32) {
    %c0_i32 = arith.constant 0 : i32
    %c0_i32_0 = arith.constant 0 : i32
    %c0_i32_1 = arith.constant 0 : i32
    return %c0_i32, %c0_i32_0 : i32, i32
  }
  func.func @transform_3(%arg0: i32) -> (i32, i32) {
    %c0_i32 = arith.constant 0 : i32
    %c0_i32_0 = arith.constant 0 : i32
    %c0_i32_1 = arith.constant 0 : i32
    return %c0_i32, %c0_i32_0 : i32, i32
  }
  func.func @transform_4(%arg0: i32) -> (i32, i32) {
    %c0_i32 = arith.constant 0 : i32
    %c0_i32_0 = arith.constant 0 : i32
    %c0_i32_1 = arith.constant 0 : i32
    return %c0_i32, %c0_i32_0 : i32, i32
  }
  func.func @transform_5(%arg0: i32) -> (i32, i32) {
    %c0_i32 = arith.constant 0 : i32
    %c0_i32_0 = arith.constant 0 : i32
    return %arg0, %c0_i32 : i32, i32
  }
}

module attributes {stable_mosaic.version = 11 : i64} {
  func.func @_ffn_kernel_resident(%arg0: i32, %arg1: memref<8x32xf32, #tpu.memory_space<vmem>>, %arg2: memref<32x64xbf16, #tpu.memory_space<vmem>>, %arg3: memref<1x64xf32, #tpu.memory_space<vmem>>, %arg4: memref<64x32xbf16, #tpu.memory_space<vmem>>, %arg5: memref<1x32xf32, #tpu.memory_space<vmem>>, %arg6: memref<8x32xf32, #tpu.memory_space<vmem>>) attributes {dimension_semantics = [#tpu.dimension_semantics<parallel>], iteration_bounds = array<i64: 2>, scalar_prefetch = 0 : i64, scratch_operands = 0 : i64, tpu.core_type = #tpu.core_type<tc>, window_params = [{transform_indices = @transform_0, window_bounds = array<i64: 8, 32>}, {pipeline_mode = #tpu.pipeline_mode<synchronous>, transform_indices = @transform_1, window_bounds = array<i64: 32, 64>}, {pipeline_mode = #tpu.pipeline_mode<synchronous>, transform_indices = @transform_2, window_bounds = array<i64: 1, 64>}, {pipeline_mode = #tpu.pipeline_mode<synchronous>, transform_indices = @transform_3, window_bounds = array<i64: 64, 32>}, {pipeline_mode = #tpu.pipeline_mode<synchronous>, transform_indices = @transform_4, window_bounds = array<i64: 1, 32>}, {transform_indices = @transform_5, window_bounds = array<i64: 8, 32>}]} {
    %c0 = arith.constant 0 : index
    %c0_0 = arith.constant 0 : index
    %0 = vector.load %arg1[%c0, %c0_0] : memref<8x32xf32, #tpu.memory_space<vmem>>, vector<8x32xf32>
    %1 = arith.truncf %0 : vector<8x32xf32> to vector<8x32xbf16>
    %c0_1 = arith.constant 0 : index
    %c0_2 = arith.constant 0 : index
    %2 = vector.load %arg2[%c0_1, %c0_2] : memref<32x64xbf16, #tpu.memory_space<vmem>>, vector<32x64xbf16>
    %cst = arith.constant dense<0.000000e+00> : vector<8x64xf32>
    %3 = tpu.matmul %1, %2, %cst {dimension_numbers = #tpu.dot_dimension_numbers<[1], [0], [0], [1], [0, 0, 1, 1], [], []>} : vector<8x32xbf16>, vector<32x64xbf16>, vector<8x64xf32> -> vector<8x64xf32>
    %c0_3 = arith.constant 0 : index
    %c0_4 = arith.constant 0 : index
    %4 = vector.load %arg3[%c0_3, %c0_4] : memref<1x64xf32, #tpu.memory_space<vmem>>, vector<1x64xf32>
    %5 = vector.broadcast %4 : vector<1x64xf32> to vector<8x64xf32>
    %6 = arith.addf %3, %5 : vector<8x64xf32>
    %cst_5 = arith.constant 0.000000e+00 : f32
    %7 = vector.broadcast %cst_5 : f32 to vector<8x64xf32>
    %8 = arith.maximumf %6, %7 : vector<8x64xf32>
    %9 = arith.truncf %8 : vector<8x64xf32> to vector<8x64xbf16>
    %c0_6 = arith.constant 0 : index
    %c0_7 = arith.constant 0 : index
    %10 = vector.load %arg4[%c0_6, %c0_7] : memref<64x32xbf16, #tpu.memory_space<vmem>>, vector<64x32xbf16>
    %cst_8 = arith.constant dense<0.000000e+00> : vector<8x32xf32>
    %11 = tpu.matmul %9, %10, %cst_8 {dimension_numbers = #tpu.dot_dimension_numbers<[1], [0], [0], [1], [0, 0, 1, 1], [], []>} : vector<8x64xbf16>, vector<64x32xbf16>, vector<8x32xf32> -> vector<8x32xf32>
    %c0_9 = arith.constant 0 : index
    %c0_10 = arith.constant 0 : index
    %12 = vector.load %arg5[%c0_9, %c0_10] : memref<1x32xf32, #tpu.memory_space<vmem>>, vector<1x32xf32>
    %13 = vector.broadcast %12 : vector<1x32xf32> to vector<8x32xf32>
    %14 = arith.addf %11, %13 : vector<8x32xf32>
    %c0_11 = arith.constant 0 : index
    %c0_12 = arith.constant 0 : index
    %15 = vector.load %arg6[%c0_11, %c0_12] : memref<8x32xf32, #tpu.memory_space<vmem>>, vector<8x32xf32>
    tpu.vector_store %arg6[%c0_11, %c0_12], %14 {strides = array<i32>} : memref<8x32xf32, #tpu.memory_space<vmem>>, vector<8x32xf32>,
    return
  }
  func.func @transform_0(%arg0: i32) -> (i32, i32) {
    %c0_i32 = arith.constant 0 : i32
    %c0_i32_0 = arith.constant 0 : i32
    return %arg0, %c0_i32 : i32, i32
  }
  func.func @transform_1(%arg0: i32) -> (i32, i32) {
    %c0_i32 = arith.constant 0 : i32
    %c0_i32_0 = arith.constant 0 : i32
    %c0_i32_1 = arith.constant 0 : i32
    return %c0_i32, %c0_i32_0 : i32, i32
  }
  func.func @transform_2(%arg0: i32) -> (i32, i32) {
    %c0_i32 = arith.constant 0 : i32
    %c0_i32_0 = arith.constant 0 : i32
    %c0_i32_1 = arith.constant 0 : i32
    return %c0_i32, %c0_i32_0 : i32, i32
  }
  func.func @transform_3(%arg0: i32) -> (i32, i32) {
    %c0_i32 = arith.constant 0 : i32
    %c0_i32_0 = arith.constant 0 : i32
    %c0_i32_1 = arith.constant 0 : i32
    return %c0_i32, %c0_i32_0 : i32, i32
  }
  func.func @transform_4(%arg0: i32) -> (i32, i32) {
    %c0_i32 = arith.constant 0 : i32
    %c0_i32_0 = arith.constant 0 : i32
    %c0_i32_1 = arith.constant 0 : i32
    return %c0_i32, %c0_i32_0 : i32, i32
  }
  func.func @transform_5(%arg0: i32) -> (i32, i32) {
    %c0_i32 = arith.constant 0 : i32
    %c0_i32_0 = arith.constant 0 : i32
    return %arg0, %c0_i32 : i32, i32
  }
}

</mosaic_0001>

<bundles_post_ra>
// kernel: tpu_custom_call.1
= control target key start
LH: loop header
LB: loop body
LE: loop exit
PB: predicated region body
PF: predicated region fallthrough
CT: control target
= control target key end

     0   :  { %10 = vsyncpa [#allocation3], 0  ;;  %s767_s0 = inlined_call_operand.vmem [shape: f32[16,32], index: 0, kind: input, shape index: {}]   ;;  %s768_s1 = inlined_call_operand.vmem [shape: bf16[32,64], index: 1, kind: input, shape index: {}]   ;;  %s769_s2 = inlined_call_operand.vmem [shape: f32[1,64], index: 2, kind: input, shape index: {}]   ;;  %s770_s3 = inlined_call_operand.vmem [shape: bf16[64,32], index: 3, kind: input, shape index: {}]   ;;  %s771_s4 = inlined_call_operand.vmem [shape: f32[1,32], index: 4, kind: input, shape index: {}]   ;;  %s772_s5 = inlined_call_operand.hbm [shape: f32[16,32], index: 5, kind: output, shape index: {}]  }
   0x1   :  { %12 = vsyncpa [#allocation3 + $0x1], 0  ;;  %s641_s18 = smov 0   ;;  %s643_s19 = smov 0  }
   0x2   :  { %s645_s20 = smov 0   ;;  %s647_s21 = smov 0  }
   0x3 LB: > { %s662_s22 = sadd.s32 4294967295, %s606_s21   ;;  %s449_s23 = sadd.s32 4294967294, %s606_s21   ;;  %s606_s21 = sphi %s647_s21, %s778_s21   ;;  %s602_s20 = sphi %s645_s20, %s777_s20   ;;  %s598_s19 = sphi %s643_s19, %s776_s19   ;;  %s594_s18 = sphi %s641_s18, %s775_s18  }
   0x4   : > { %s666_s24 = sadd.s32 1, %s606_s21   ;;  %s135_s25 = sadd.s32 1, %s602_s20 }
   0x5   : > { %s132_s26 = ssub.s32 %s606_s21, %s666_s24  ;;  %p145_p0 = scmp.ne.s32.totalorder %s602_s20, %s598_s19 }
   0x6   : > { %p133_p1 = scmp.eq.s32.totalorder %s132_s26, 0  ;;  %p146_p2 = scmp.eq.s32.totalorder %s662_s22, 1 }
   0x7   : > { %p151_p3 = scmp.ne.s32.totalorder %s598_s19, %s594_s18  ;;  %p152_p4 = scmp.eq.s32.totalorder %s449_s23, 1 }
   0x8   : > { %s677_s27 = scalar_select %p133_p1, %s602_s20, %s135_s25  }
   0x9   : > { %p679_p5 = por %p146_p2, %p145_p0  ;;  %p683_p6 = por %p152_p4, %p151_p3 }
   0xa   : > { %p452_p7 = scmp.ge.s32.totalorder %s606_s21, 1  ;;  %p189_p8 = scmp.lt.s32.totalorder %s606_s21, 3 }
   0xc   : > { %p190_p9 = pnand %p452_p7, %p189_p8 }
   0xd   : > { %v538_v0 = vld [vmem:[%s768_s1] sm:$0xff] (!%p190_p9)   ;;  %v608_v1 = vmov (!%p190_p9), 0.0   ;;  %v539_v2 = vld [vmem:[%s768_s1 + $0x8] sm:$0xff] (!%p190_p9)   ;;  %vm609_vm0 = vmmov (!%p190_p9), 0   ;;  %p216_p10 = scmp.lt.s32.totalorder (!%p190_p9), %s662_s22, 1  ;;  %vm246_vm1 = vcmask (!%p190_p9), 261120  }
   0xe   : > { %193 = sbr.rel (%p190_p9) target bundleno = 474 (0x1da), region = 40  ;;  %477 = vmatprep.subr.bf16.mxu0 (!%p190_p9), %v608_v1  ;;  %485 = vmatprep.subr.bf16.mxu1 (!%p190_p9), %v608_v1  ;;  %v540_v3 = vld [vmem:[%s770_s3] sm:$0xff] (!%p190_p9)   ;;  %v541_v4 = vld [vmem:[%s770_s3 + $0x8] sm:$0xff] (!%p190_p9)   ;;  %v542_v7 = vld [vmem:[%s770_s3 + $0x10] sm:$0xff] (!%p190_p9)   ;;  %vm331_vm2 = vcmask (!%p190_p9), 523264   ;;  %s213_s8 = sand.u32 (!%p190_p9), 1, %s598_s19  }
   0xf   : > { %478 = vmatpush3.bf16.msra.mxu0 (!%p190_p9), %v538_v0  ;;  %481 = vmatprep.mubr.msk.bf16.mxu0 (!%p190_p9), %vm609_vm0, %v608_v1  ;;  %v543_v8 = vld [vmem:[%s770_s3 + $0x18] sm:$0xff] (!%p190_p9)   ;;  %v455_v9 = vld [vmem:[%s769_s2] ss:$0 sm:$0xff] (!%p190_p9)  ;;  %s453_s9 = sshll.u32 (!%p190_p9), %s213_s8, 3  ;;  %s466_s12 = sshll.u32 (!%p190_p9), %s662_s22, 7 }
  0x10   : > { %479 = vmatprep.subr.bf16.mxu0 (!%p190_p9), %v608_v1  ;;  %493 = vmatprep.mubr.msk.bf16.mxu1 (!%p190_p9), %vm609_vm0, %v608_v1  ;;  %v459_v17 = vld [vmem:[%s771_s4] ss:$0 sm:$0xff] (!%p190_p9)  ;;  %s215_s13 = scalar_lea.vmem (!%p190_p9), [#allocation2], %s453_s9  ;;  %s610_s25 = smov (!%p190_p9), [#allocation2]  }
  0x11   : > { %486 = vmatpush3.bf16.msra.mxu1 (!%p190_p9), %v540_v3  ;;  %s548_s26 = sshll.u32 (!%p190_p9), %s610_s25, 4  ;;  %s549_s26 = int_to_ptr.vmem [resolvable:$false] %s548_s26 }
  0x12   : > { %487 = vmatprep.subr.bf16.mxu1 (!%p190_p9), %v608_v1  ;;  %s550_s30 = scalar_lea.vmem (!%p190_p9), %s549_s26, 256 }
  0x13   : > { %480 = vmatpush3.bf16.msra.mxu0 (!%p190_p9), %v539_v2 }
  0x15   : > { %s217_s11 = scalar_select %p216_p10, %s662_s22, 1  ;;  %488 = vmatpush3.bf16.msra.mxu1 %v541_v4 }
  0x16   : > { %489 = vmatprep.subr.bf16.mxu1 %v608_v1  ;;  %s377_s22 = scalar_lea.sflag [#allocation3], %s213_s8 }
  0x17   : > { %s454_s14 = sshll.u32 %s217_s11, 3 }
  0x18   : > { %s219_s17 = scalar_lea.vmem %s767_s0, %s454_s14  ;;  %s390_s14 = sshll.u32 %s215_s13, 4  ;;  %s726_s14 = int_to_ptr.vmem [resolvable:$true] %s390_s14 }
  0x19   : > { %v221_v5 = vld [vmem:[%s219_s17] sm:$0xff]  ;;  %490 = vmatpush3.bf16.msra.mxu1 %v542_v7  ;;  %s724_s17 = scalar_lea.hbm %s772_s5, %s466_s12  ;;  %s544_s23 = scalar_lea.vmem %s726_s14, 128 }
  0x1a   : > { %v222_v6 = vpack.c.bf16 %v221_v5, %v221_v5  ;;  %491 = vmatprep.subr.bf16.mxu1 %v608_v1  ;;  %p545_p11 = scmp.ne.s32.totalorder %s726_s14, %s544_s23  ;;  %p551_p0 = scmp.lt.s32.totalorder %s726_s14, %s549_s26 }
  0x1b   : > { %p552_p1 = scmp.lt.s32.totalorder %s550_s30, %s544_s23 }
  0x1c   : > { %482 = vmatmul.mubr.msk.bf16.vlgmr.msra.gmra.mrb[0].mxu0 %vm246_vm1, %v222_v6  ;;  %p546_p12 = pnand %p545_p11, %p679_p5 }
  0x1d   : > { %492 = vmatpush3.bf16.msra.mxu1 %v543_v8  ;;  %p553_p2 = por %p552_p1, %p551_p0 }
  0x1e   : > { %p547_p13 = pneg %p546_p12 }
  0x20   : > { %p554_p3 = pnand %p553_p2, %p547_p13 }
  0xef   : > { %v284_v10 = vpop.f32.mrb[0].mxu0 }
  0xf0   : > { %v285_v11 = vadd.f32 %v455_v9, %v284_v10  ;;  %v483_v12 = vpop.f32.mrb[1].mxu0 }
  0xf1   : > { %v287_v13 = vpop.f32.mrb[2].mxu0 }
  0xf2   : > { %v290_v14 = vmax.f32 %v285_v11, 0.0  ;;  %v484_v15 = vpop.f32.mrb[3].mxu0 }
  0xf4   : > { %v291_v16 = vpack.c.bf16 %v290_v14, %v290_v14 }
  0xf6   : > { %494 = vmatmul.mubr.msk.bf16.vlgmr.msra.gmra.mrb[0].mxu1 %vm331_vm2, %v291_v16 }
 0x1c9   : > { %v369_v18 = vpop.f32.mrb[0].mxu1 }
 0x1ca   : > { %v370_v19 = vadd.f32 %v459_v17, %v369_v18  ;;  %v495_v20 = vpop.f32.mrb[1].mxu1 }
 0x1cb   : > { %v372_v21 = vpop.f32.mrb[2].mxu1 }
 0x1cc   : > { %v496_v22 = vpop.f32.mrb[3].mxu1  ;;  %375 = vst.msk [vmem:[%s215_s13] sm:$0xff] %vm246_vm1, %v370_v19 }
 0x1cd   : > { %557 = shalt.err (!%p554_p3)
}
 0x1ce   : > { %s558_s6 = scalar_lea.hbm %s724_s17, 128  ;;  %s562_s9 = scalar_lea.hbm %s772_s5, 256 }
 0x1cf   : > { %p559_p4 = scmp.ne.s32.totalorder %s724_s17, %s558_s6  ;;  %p563_p9 = scmp.lt.u32.totalorder %s724_s17, %s772_s5 }
 0x1d0   : > { %p564_p10 = scmp.lt.u32.totalorder %s562_s9, %s558_s6  ;;  %p566_p12 = scmp.lt.u32.totalorder %s558_s6, %s724_s17 }
 0x1d1   : > { %p560_p7 = pnand %p559_p4, %p679_p5 }
 0x1d2   : > { %p565_p11 = por %p564_p10, %p563_p9 }
 0x1d3   : > { %p561_p8 = pneg %p560_p7 }
 0x1d4   : > { %p567_p13 = por %p566_p12, %p565_p11 }
 0x1d6   : > { %p568_p0 = pnand %p567_p13, %p561_p8 }
 0x1d8   : > { %571 = shalt.err (!%p568_p0)
}
 0x1d9   : > { %497 = dma.vmem_to_hbm [thread:$0]  (%p679_p5), %s726_s14, 128, %s724_s17, %s377_s22  }
 0x1da PF: > { %p503_p1 = scmp.ge.s32.totalorder %s606_s21, 2  ;;  %s402_s12 = sand.u32 1, %s594_s18  }
 0x1db   : > { %s403_s13 = scalar_lea.sflag [#allocation3], %s402_s12 }
 0x1dc   : > { %p500_p2 = pnand %p503_p1, %p683_p6 }
 0x1de   : > { %589 = dma.done.wait (!%p500_p2), %s403_s13, 128  }
 0x1df   : > { %591 = vsyncadd (!%p500_p2), %s403_s13, 4294967168  ;;  %p15_p3 = scmp.ge.s32.totalorder %s666_s24, 4   ;;  %s775_s18 = smov %s598_s19 }
 0x1e0   : > { %s776_s19 = smov %s602_s20  ;;  %s777_s20 = smov %s677_s27 }
 0x1e1   : > { %s778_s21 = smov %s666_s24  ;;  %17 = sbr.rel (!%p15_p3) target bundleno = 3 (0x3), region = 75 }
 0x1e8   :  { %408 = vsyncpa [#allocation3], 1 }
 0x1e9   :  { %410 = vsyncpa [#allocation3 + $0x1], 1 }

// kernel: tpu_custom_call.1
= control target key start
LH: loop header
LB: loop body
LE: loop exit
PB: predicated region body
PF: predicated region fallthrough
CT: control target
= control target key end

     0   :  { %10 = vsyncpa [#allocation3], 0  ;;  %s767_s0 = inlined_call_operand.vmem [shape: f32[16,32], index: 0, kind: input, shape index: {}]   ;;  %s768_s1 = inlined_call_operand.vmem [shape: bf16[32,64], index: 1, kind: input, shape index: {}]   ;;  %s769_s2 = inlined_call_operand.vmem [shape: f32[1,64], index: 2, kind: input, shape index: {}]   ;;  %s770_s3 = inlined_call_operand.vmem [shape: bf16[64,32], index: 3, kind: input, shape index: {}]   ;;  %s771_s4 = inlined_call_operand.vmem [shape: f32[1,32], index: 4, kind: input, shape index: {}]   ;;  %s772_s5 = inlined_call_operand.hbm [shape: f32[16,32], index: 5, kind: output, shape index: {}]  }
   0x1   :  { %12 = vsyncpa [#allocation3 + $0x1], 0  ;;  %s641_s18 = smov 0   ;;  %s643_s19 = smov 0  }
   0x2   :  { %s645_s20 = smov 0   ;;  %s647_s21 = smov 0  }
   0x3 LB: > { %s662_s22 = sadd.s32 4294967295, %s606_s21   ;;  %s449_s23 = sadd.s32 4294967294, %s606_s21   ;;  %s606_s21 = sphi %s647_s21, %s778_s21   ;;  %s602_s20 = sphi %s645_s20, %s777_s20   ;;  %s598_s19 = sphi %s643_s19, %s776_s19   ;;  %s594_s18 = sphi %s641_s18, %s775_s18  }
   0x4   : > { %s666_s24 = sadd.s32 1, %s606_s21   ;;  %s135_s25 = sadd.s32 1, %s602_s20 }
   0x5   : > { %s132_s26 = ssub.s32 %s606_s21, %s666_s24  ;;  %p145_p0 = scmp.ne.s32.totalorder %s602_s20, %s598_s19 }
   0x6   : > { %p133_p1 = scmp.eq.s32.totalorder %s132_s26, 0  ;;  %p146_p2 = scmp.eq.s32.totalorder %s662_s22, 1 }
   0x7   : > { %p151_p3 = scmp.ne.s32.totalorder %s598_s19, %s594_s18  ;;  %p152_p4 = scmp.eq.s32.totalorder %s449_s23, 1 }
   0x8   : > { %s677_s27 = scalar_select %p133_p1, %s602_s20, %s135_s25  }
   0x9   : > { %p679_p5 = por %p146_p2, %p145_p0  ;;  %p683_p6 = por %p152_p4, %p151_p3 }
   0xa   : > { %p452_p7 = scmp.ge.s32.totalorder %s606_s21, 1  ;;  %p189_p8 = scmp.lt.s32.totalorder %s606_s21, 3 }
   0xc   : > { %p190_p9 = pnand %p452_p7, %p189_p8 }
   0xd   : > { %v538_v0 = vld [vmem:[%s768_s1] sm:$0xff] (!%p190_p9)   ;;  %v608_v1 = vmov (!%p190_p9), 0.0   ;;  %v539_v2 = vld [vmem:[%s768_s1 + $0x8] sm:$0xff] (!%p190_p9)   ;;  %vm609_vm0 = vmmov (!%p190_p9), 0   ;;  %p216_p10 = scmp.lt.s32.totalorder (!%p190_p9), %s662_s22, 1  ;;  %vm246_vm1 = vcmask (!%p190_p9), 261120  }
   0xe   : > { %193 = sbr.rel (%p190_p9) target bundleno = 474 (0x1da), region = 40  ;;  %477 = vmatprep.subr.bf16.mxu0 (!%p190_p9), %v608_v1  ;;  %485 = vmatprep.subr.bf16.mxu1 (!%p190_p9), %v608_v1  ;;  %v540_v3 = vld [vmem:[%s770_s3] sm:$0xff] (!%p190_p9)   ;;  %v541_v4 = vld [vmem:[%s770_s3 + $0x8] sm:$0xff] (!%p190_p9)   ;;  %v542_v7 = vld [vmem:[%s770_s3 + $0x10] sm:$0xff] (!%p190_p9)   ;;  %vm331_vm2 = vcmask (!%p190_p9), 523264   ;;  %s213_s8 = sand.u32 (!%p190_p9), 1, %s598_s19  }
   0xf   : > { %478 = vmatpush3.bf16.msra.mxu0 (!%p190_p9), %v538_v0  ;;  %481 = vmatprep.mubr.msk.bf16.mxu0 (!%p190_p9), %vm609_vm0, %v608_v1  ;;  %v543_v8 = vld [vmem:[%s770_s3 + $0x18] sm:$0xff] (!%p190_p9)   ;;  %v455_v9 = vld [vmem:[%s769_s2] ss:$0 sm:$0xff] (!%p190_p9)  ;;  %s453_s9 = sshll.u32 (!%p190_p9), %s213_s8, 3  ;;  %s466_s12 = sshll.u32 (!%p190_p9), %s662_s22, 7 }
  0x10   : > { %479 = vmatprep.subr.bf16.mxu0 (!%p190_p9), %v608_v1  ;;  %493 = vmatprep.mubr.msk.bf16.mxu1 (!%p190_p9), %vm609_vm0, %v608_v1  ;;  %v459_v17 = vld [vmem:[%s771_s4] ss:$0 sm:$0xff] (!%p190_p9)  ;;  %s215_s13 = scalar_lea.vmem (!%p190_p9), [#allocation2], %s453_s9  ;;  %s610_s25 = smov (!%p190_p9), [#allocation2]  }
  0x11   : > { %486 = vmatpush3.bf16.msra.mxu1 (!%p190_p9), %v540_v3  ;;  %s548_s26 = sshll.u32 (!%p190_p9), %s610_s25, 4  ;;  %s549_s26 = int_to_ptr.vmem [resolvable:$false] %s548_s26 }
  0x12   : > { %487 = vmatprep.subr.bf16.mxu1 (!%p190_p9), %v608_v1  ;;  %s550_s30 = scalar_lea.vmem (!%p190_p9), %s549_s26, 256 }
  0x13   : > { %480 = vmatpush3.bf16.msra.mxu0 (!%p190_p9), %v539_v2 }
  0x15   : > { %s217_s11 = scalar_select %p216_p10, %s662_s22, 1  ;;  %488 = vmatpush3.bf16.msra.mxu1 %v541_v4 }
  0x16   : > { %489 = vmatprep.subr.bf16.mxu1 %v608_v1  ;;  %s377_s22 = scalar_lea.sflag [#allocation3], %s213_s8 }
  0x17   : > { %s454_s14 = sshll.u32 %s217_s11, 3 }
  0x18   : > { %s219_s17 = scalar_lea.vmem %s767_s0, %s454_s14  ;;  %s390_s14 = sshll.u32 %s215_s13, 4  ;;  %s726_s14 = int_to_ptr.vmem [resolvable:$true] %s390_s14 }
  0x19   : > { %v221_v5 = vld [vmem:[%s219_s17] sm:$0xff]  ;;  %490 = vmatpush3.bf16.msra.mxu1 %v542_v7  ;;  %s724_s17 = scalar_lea.hbm %s772_s5, %s466_s12  ;;  %s544_s23 = scalar_lea.vmem %s726_s14, 128 }
  0x1a   : > { %v222_v6 = vpack.c.bf16 %v221_v5, %v221_v5  ;;  %491 = vmatprep.subr.bf16.mxu1 %v608_v1  ;;  %p545_p11 = scmp.ne.s32.totalorder %s726_s14, %s544_s23  ;;  %p551_p0 = scmp.lt.s32.totalorder %s726_s14, %s549_s26 }
  0x1b   : > { %p552_p1 = scmp.lt.s32.totalorder %s550_s30, %s544_s23 }
  0x1c   : > { %482 = vmatmul.mubr.msk.bf16.vlgmr.msra.gmra.mrb[0].mxu0 %vm246_vm1, %v222_v6  ;;  %p546_p12 = pnand %p545_p11, %p679_p5 }
  0x1d   : > { %492 = vmatpush3.bf16.msra.mxu1 %v543_v8  ;;  %p553_p2 = por %p552_p1, %p551_p0 }
  0x1e   : > { %p547_p13 = pneg %p546_p12 }
  0x20   : > { %p554_p3 = pnand %p553_p2, %p547_p13 }
  0xef   : > { %v284_v10 = vpop.f32.mrb[0].mxu0 }
  0xf0   : > { %v285_v11 = vadd.f32 %v455_v9, %v284_v10  ;;  %v483_v12 = vpop.f32.mrb[1].mxu0 }
  0xf1   : > { %v287_v13 = vpop.f32.mrb[2].mxu0 }
  0xf2   : > { %v290_v14 = vmax.f32 %v285_v11, 0.0  ;;  %v484_v15 = vpop.f32.mrb[3].mxu0 }
  0xf4   : > { %v291_v16 = vpack.c.bf16 %v290_v14, %v290_v14 }
  0xf6   : > { %494 = vmatmul.mubr.msk.bf16.vlgmr.msra.gmra.mrb[0].mxu1 %vm331_vm2, %v291_v16 }
 0x1c9   : > { %v369_v18 = vpop.f32.mrb[0].mxu1 }
 0x1ca   : > { %v370_v19 = vadd.f32 %v459_v17, %v369_v18  ;;  %v495_v20 = vpop.f32.mrb[1].mxu1 }
 0x1cb   : > { %v372_v21 = vpop.f32.mrb[2].mxu1 }
 0x1cc   : > { %v496_v22 = vpop.f32.mrb[3].mxu1  ;;  %375 = vst.msk [vmem:[%s215_s13] sm:$0xff] %vm246_vm1, %v370_v19 }
 0x1cd   : > { %557 = shalt.err (!%p554_p3)
}
 0x1ce   : > { %s558_s6 = scalar_lea.hbm %s724_s17, 128  ;;  %s562_s9 = scalar_lea.hbm %s772_s5, 256 }
 0x1cf   : > { %p559_p4 = scmp.ne.s32.totalorder %s724_s17, %s558_s6  ;;  %p563_p9 = scmp.lt.u32.totalorder %s724_s17, %s772_s5 }
 0x1d0   : > { %p564_p10 = scmp.lt.u32.totalorder %s562_s9, %s558_s6  ;;  %p566_p12 = scmp.lt.u32.totalorder %s558_s6, %s724_s17 }
 0x1d1   : > { %p560_p7 = pnand %p559_p4, %p679_p5 }
 0x1d2   : > { %p565_p11 = por %p564_p10, %p563_p9 }
 0x1d3   : > { %p561_p8 = pneg %p560_p7 }
 0x1d4   : > { %p567_p13 = por %p566_p12, %p565_p11 }
 0x1d6   : > { %p568_p0 = pnand %p567_p13, %p561_p8 }
 0x1d8   : > { %571 = shalt.err (!%p568_p0)
}
 0x1d9   : > { %497 = dma.vmem_to_hbm [thread:$0]  (%p679_p5), %s726_s14, 128, %s724_s17, %s377_s22  }
 0x1da PF: > { %p503_p1 = scmp.ge.s32.totalorder %s606_s21, 2  ;;  %s402_s12 = sand.u32 1, %s594_s18  }
 0x1db   : > { %s403_s13 = scalar_lea.sflag [#allocation3], %s402_s12 }
 0x1dc   : > { %p500_p2 = pnand %p503_p1, %p683_p6 }
 0x1de   : > { %589 = dma.done.wait (!%p500_p2), %s403_s13, 128  }
 0x1df   : > { %591 = vsyncadd (!%p500_p2), %s403_s13, 4294967168  ;;  %p15_p3 = scmp.ge.s32.totalorder %s666_s24, 4   ;;  %s775_s18 = smov %s598_s19 }
 0x1e0   : > { %s776_s19 = smov %s602_s20  ;;  %s777_s20 = smov %s677_s27 }
 0x1e1   : > { %s778_s21 = smov %s666_s24  ;;  %17 = sbr.rel (!%p15_p3) target bundleno = 3 (0x3), region = 75 }
 0x1e8   :  { %408 = vsyncpa [#allocation3], 1 }
 0x1e9   :  { %410 = vsyncpa [#allocation3 + $0x1], 1 }

</bundles_post_ra>
